<compile_context>
chip_gen: v6e
topology: v6e:2x2x1
jax: 0.10.0
libtpu: 0.0.40
codegen_flags: <defaults>
</compile_context>

<pallas_src>
import jax
import jax.numpy as jnp
from jax import lax
from jax.experimental import pallas as pl
from jax.experimental.pallas import tpu as pltpu

EPS = 1e-5


def _make_resblock_kernel(N, H, W, Cin, Cout):
    """Builds the fused ResBlock kernel for static shapes."""
    M = N * H                      # rows presented to the MXU
    inv_cnt = 1.0 / float(N * H * W)

    def bn_relu(acc, p_ref, g_ref, b_ref):
        # Training-mode BN over (N,H,W), biased variance, E[x^2]-E[x]^2 form.
        # (Mild stability caveat vs the centered form; post-conv activations
        # are O(1) here, well within the 1e-4 test tolerance.)
        col_sum = jnp.sum(acc, axis=0, keepdims=True)             # (1, W*C)
        sq_sum = jnp.sum(acc * acc, axis=0, keepdims=True)        # (1, W*C)
        # One stacked (2, W*C) @ P matmul folds W out of the lane dim AND
        # re-broadcasts the per-channel stats back to lane-dense rows.
        stats = jnp.dot(jnp.concatenate([col_sum, sq_sum], axis=0), p_ref[...],
                        preferred_element_type=jnp.float32) * inv_cnt  # (2, W*C)
        mean_full = stats[0:1, :]
        var_full = stats[1:2, :] - mean_full * mean_full
        # Fused epilogue: y = max(acc * scale + shift, 0); rsqrt -> EUP slot.
        scale = g_ref[...] * lax.rsqrt(var_full + EPS)            # (1, W*C)
        shift = b_ref[...] - mean_full * scale                    # (1, W*C)
        return jnp.maximum(acc * scale + shift, 0.0)              # (M, W*C)

    def kernel(xk1_ref, w1_ref, p1_ref, g1_ref, b1_ref,
               w2_ref, p2_ref, g2_ref, b2_ref, out_ref):
        # xk1_ref: (N*H, 3*W*Cin)  K-stacked im2col rows for layer 1
        # w*_ref : (3*W*Cin, W*C_out_layer)  K-stacked banded conv weights
        # p*_ref : (W*C, W*C)  channel-fold + re-broadcast projection
        # g*/b*  : (1, W*C)  pre-tiled BN gamma / beta
        # out_ref: (N*H, W*Cout)

        # ---- layer 1: conv(Cin->Cin) as ONE K-stacked matmul + BN + ReLU ----
        acc1 = jnp.dot(xk1_ref[...], w1_ref[...],
                       preferred_element_type=jnp.float32)        # (M, W*Cin)
        y1 = bn_relu(acc1, p1_ref, g1_ref, b1_ref)

        # ---- layer-2 im2col-along-K, kept entirely in vregs ----
        # up[r] = y1[r-1], down[r] = y1[r+1]; rows crossing an image boundary
        # (h == 0 / h == H-1, including the roll wrap rows) are zeroed, which
        # reproduces the implicit H zero padding without a VMEM round-trip.
        row = lax.broadcasted_iota(jnp.int32, (M, 1), 0)
        up = jnp.where((row % H) == 0, 0.0, pltpu.roll(y1, 1, axis=0))
        down = jnp.where((row % H) == (H - 1), 0.0,
                         pltpu.roll(y1, M - 1, axis=0))           # shift of -1
        lhs2 = jnp.concatenate([up, y1, down], axis=-1)           # (M, 3*W*Cin)

        # ---- layer 2: conv(Cin->Cout) as ONE K-stacked matmul + BN + ReLU ----
        acc2 = jnp.dot(lhs2, w2_ref[...],
                       preferred_element_type=jnp.float32)        # (M, W*Cout)
        out_ref[...] = bn_relu(acc2, p2_ref, g2_ref, b2_ref)

    return kernel


def _banded_stacked_weights(w_oihw, W):
    """(O, I, 3, 3) conv weights -> (3*W*I, W*O) K-stacked banded matmul operand.

    Row block kh satisfies
      B_kh[w'*I + ci, w*O + co] = w[co, ci, kh, w' - w + 1]  (0 outside the band),
    so `row(h+kh) @ B_kh` realizes the kw shifts AND the implicit W zero padding.
    Stacking the three kh taps along K lets the MXU accumulate them in one pass.
    """
    O, I = w_oihw.shape[0], w_oihw.shape[1]
    mats = []
    for kh in range(3):
        b = jnp.zeros((W * I, W * O), jnp.float32)
        for kw in range(3):
            shift = jnp.eye(W, k=1 - kw, dtype=jnp.float32)       # (W, W)
            b = b + jnp.kron(shift, jnp.transpose(w_oihw[:, :, kh, kw]))
        mats.append(b)
    return jnp.concatenate(mats, axis=0)                          # (3*W*I, W*O)


def prepare_resblock_params(params, W):
    """One-time parameter prep (keep OUTSIDE the per-step jit for inference)."""
    Cin = params["w1"].shape[1]
    Cout = params["w2"].shape[0]
    return {
        "w1s": _banded_stacked_weights(params["w1"], W),          # (3*W*Cin, W*Cin)
        "w2s": _banded_stacked_weights(params["w2"], W),          # (3*W*Cin, W*Cout)
        # P = sel @ sel^T: (x @ P)[w*C + c] = sum_{w'} x[w'*C + c]
        # (fold W out of the lane dim and re-broadcast, lane order w-major/c-minor).
        "p1": jnp.tile(jnp.eye(Cin, dtype=jnp.float32), (W, W)),  # (W*Cin, W*Cin)
        "p2": jnp.tile(jnp.eye(Cout, dtype=jnp.float32), (W, W)), # (W*Cout, W*Cout)
        "g1": jnp.tile(params["g1"].reshape(1, Cin), (1, W)),     # (1, W*Cin)
        "b1": jnp.tile(params["b1"].reshape(1, Cin), (1, W)),
        "g2": jnp.tile(params["g2"].reshape(1, Cout), (1, W)),    # (1, W*Cout)
        "b2": jnp.tile(params["b2"].reshape(1, Cout), (1, W)),
    }


@jax.jit
def resblock_forward(x_nchw, prep):
    """ResBlock.forward: (conv3x3 -> BN(train stats) -> ReLU) x 2.  NCHW in/out."""
    N, Cin, H, W = x_nchw.shape
    Cout = prep["w2s"].shape[1] // W

    # NCHW -> NHWC (module contract is NCHW; keep NHWC end-to-end upstream to
    # drop these transposes if possible), pad H only (the W halo lives in the
    # banded weights), then im2col along K: lane block kh of row (n, h) holds
    # the H-padded row h+kh, so the whole conv is one (N*H, 3*W*Cin) matmul.
    x = jnp.transpose(x_nchw, (0, 2, 3, 1))
    xpad = jnp.pad(x, ((0, 0), (1, 1), (0, 0), (0, 0))).reshape(N, H + 2, W * Cin)
    xk1 = jnp.stack([xpad[:, 0:H], xpad[:, 1:H + 1], xpad[:, 2:H + 2]],
                    axis=2).reshape(N * H, 3 * W * Cin)

    kernel = _make_resblock_kernel(N, H, W, Cin, Cout)
    out = pl.pallas_call(
        kernel,
        out_shape=jax.ShapeDtypeStruct((N * H, W * Cout), jnp.float32),
        in_specs=[pl.BlockSpec(memory_space=pltpu.MemorySpace.VMEM)] * 9,
        out_specs=pl.BlockSpec(memory_space=pltpu.MemorySpace.VMEM),
        compiler_params=pltpu.CompilerParams(vmem_limit_bytes=32 * 1024 * 1024),
    )(xk1, prep["w1s"], prep["p1"], prep["g1"], prep["b1"],
      prep["w2s"], prep["p2"], prep["g2"], prep["b2"])

    # (N*H, W*Cout) lane-dense slab -> NCHW
    return jnp.transpose(out.reshape(N, H, W, Cout), (0, 3, 1, 2))


# ---------------- pure-JAX reference (for correctness check) ----------------
def _ref_conv_bn_relu(x_nchw, w_oihw, gamma, beta):
    y = lax.conv_general_dilated(
        x_nchw, w_oihw, window_strides=(1, 1), padding=((1, 1), (1, 1)),
        dimension_numbers=("NCHW", "OIHW", "NCHW"))
    mean = jnp.mean(y, axis=(0, 2, 3), keepdims=True)
    var = jnp.mean((y - mean) ** 2, axis=(0, 2, 3), keepdims=True)
    y = (y - mean) * lax.rsqrt(var + EPS)
    y = y * gamma.reshape(1, -1, 1, 1) + beta.reshape(1, -1, 1, 1)
    return jnp.maximum(y, 0.0)


def _ref_resblock(x_nchw, params):
    x = _ref_conv_bn_relu(x_nchw, params["w1"], params["g1"], params["b1"])
    x = _ref_conv_bn_relu(x, params["w2"], params["g2"], params["b2"])
    return x


if __name__ == "__main__":
    in_channel, out_channel = 4, 8
    N, H, W = 2, 16, 16

    key = jax.random.PRNGKey(0)
    kx, kw1, kw2 = jax.random.split(key, 3)

    x = jax.random.normal(kx, (N, in_channel, H, W), dtype=jnp.float32)

    params = {
        # Conv2d(in, in, 3) / Conv2d(in, out, 3), bias=False -> OIHW weights
        "w1": 0.1 * jax.random.normal(kw1, (in_channel, in_channel, 3, 3),
                                      dtype=jnp.float32),
        "g1": jnp.ones((in_channel,), jnp.float32),
        "b1": jnp.zeros((in_channel,), jnp.float32),
        "w2": 0.1 * jax.random.normal(kw2, (out_channel, in_channel, 3, 3),
                                      dtype=jnp.float32),
        "g2": jnp.ones((out_channel,), jnp.float32),
        "b2": jnp.zeros((out_channel,), jnp.float32),
    }

    prep = prepare_resblock_params(params, W)   # one-time (inference) prep

    out = jax.block_until_ready(resblock_forward(x, prep))
    ref = jax.block_until_ready(_ref_resblock(x, params))

    assert out.shape == (N, out_channel, H, W)
    assert jnp.allclose(out, ref, rtol=1e-4, atol=1e-4), (
        float(jnp.max(jnp.abs(out - ref))))
    print("KERNEL_OK")
</pallas_src>

<mosaic_0001>
module attributes {stable_mosaic.version = 11 : i64} {
  func.func @kernel(%arg0: memref<32x192xf32, #tpu.memory_space<vmem>>, %arg1: memref<192x64xf32, #tpu.memory_space<vmem>>, %arg2: memref<64x64xf32, #tpu.memory_space<vmem>>, %arg3: memref<1x64xf32, #tpu.memory_space<vmem>>, %arg4: memref<1x64xf32, #tpu.memory_space<vmem>>, %arg5: memref<192x128xf32, #tpu.memory_space<vmem>>, %arg6: memref<128x128xf32, #tpu.memory_space<vmem>>, %arg7: memref<1x128xf32, #tpu.memory_space<vmem>>, %arg8: memref<1x128xf32, #tpu.memory_space<vmem>>, %arg9: memref<32x128xf32, #tpu.memory_space<vmem>>) attributes {dimension_semantics = [], scalar_prefetch = 0 : i64, scratch_operands = 0 : i64, tpu.core_type = #tpu.core_type<tc>} {
    %c0 = arith.constant 0 : index
    %c0_0 = arith.constant 0 : index
    %0 = vector.load %arg0[%c0, %c0_0] : memref<32x192xf32, #tpu.memory_space<vmem>>, vector<32x192xf32>
    %c0_1 = arith.constant 0 : index
    %c0_2 = arith.constant 0 : index
    %1 = vector.load %arg1[%c0_1, %c0_2] : memref<192x64xf32, #tpu.memory_space<vmem>>, vector<192x64xf32>
    %cst = arith.constant dense<0.000000e+00> : vector<32x64xf32>
    %2 = tpu.matmul %0, %1, %cst {dimension_numbers = #tpu.dot_dimension_numbers<[1], [0], [0], [1], [0, 0, 1, 1], [], []>} : vector<32x192xf32>, vector<192x64xf32>, vector<32x64xf32> -> vector<32x64xf32>
    %cst_3 = arith.constant dense<0.000000e+00> : vector<64xf32>
    %3 = vector.multi_reduction <add>, %2, %cst_3 [0] : vector<32x64xf32> to vector<64xf32>
    %4 = vector.shape_cast %3 : vector<64xf32> to vector<1x64xf32>
    %5 = arith.mulf %2, %2 : vector<32x64xf32>
    %cst_4 = arith.constant dense<0.000000e+00> : vector<64xf32>
    %6 = vector.multi_reduction <add>, %5, %cst_4 [0] : vector<32x64xf32> to vector<64xf32>
    %7 = vector.shape_cast %6 : vector<64xf32> to vector<1x64xf32>
    %8 = tpu.concatenate %4, %7 in 0 : vector<1x64xf32>, vector<1x64xf32> -> vector<2x64xf32>
    %c0_5 = arith.constant 0 : index
    %c0_6 = arith.constant 0 : index
    %9 = vector.load %arg2[%c0_5, %c0_6] : memref<64x64xf32, #tpu.memory_space<vmem>>, vector<64x64xf32>
    %cst_7 = arith.constant dense<0.000000e+00> : vector<2x64xf32>
    %10 = tpu.matmul %8, %9, %cst_7 {dimension_numbers = #tpu.dot_dimension_numbers<[1], [0], [0], [1], [0, 0, 1, 1], [], []>} : vector<2x64xf32>, vector<64x64xf32>, vector<2x64xf32> -> vector<2x64xf32>
    %cst_8 = arith.constant 0.001953125 : f32
    %11 = vector.broadcast %cst_8 : f32 to vector<2x64xf32>
    %12 = arith.mulf %10, %11 : vector<2x64xf32>
    %13 = vector.extract_strided_slice %12 {offsets = [0, 0], sizes = [1, 64], strides = [1, 1]} : vector<2x64xf32> to vector<1x64xf32>
    %14 = vector.extract_strided_slice %12 {offsets = [1, 0], sizes = [1, 64], strides = [1, 1]} : vector<2x64xf32> to vector<1x64xf32>
    %15 = arith.mulf %13, %13 : vector<1x64xf32>
    %16 = arith.subf %14, %15 : vector<1x64xf32>
    %c0_9 = arith.constant 0 : index
    %c0_10 = arith.constant 0 : index
    %17 = vector.load %arg3[%c0_9, %c0_10] : memref<1x64xf32, #tpu.memory_space<vmem>>, vector<1x64xf32>
    %cst_11 = arith.constant 9.99999974E-6 : f32
    %18 = vector.broadcast %cst_11 : f32 to vector<1x64xf32>
    %19 = arith.addf %16, %18 : vector<1x64xf32>
    %20 = math.rsqrt %19 : vector<1x64xf32>
    %21 = arith.mulf %17, %20 : vector<1x64xf32>
    %c0_12 = arith.constant 0 : index
    %c0_13 = arith.constant 0 : index
    %22 = vector.load %arg4[%c0_12, %c0_13] : memref<1x64xf32, #tpu.memory_space<vmem>>, vector<1x64xf32>
    %23 = arith.mulf %13, %21 : vector<1x64xf32>
    %24 = arith.subf %22, %23 : vector<1x64xf32>
    %25 = vector.broadcast %21 : vector<1x64xf32> to vector<32x64xf32>
    %26 = arith.mulf %2, %25 : vector<32x64xf32>
    %27 = vector.broadcast %24 : vector<1x64xf32> to vector<32x64xf32>
    %28 = arith.addf %26, %27 : vector<32x64xf32>
    %cst_14 = arith.constant 0.000000e+00 : f32
    %29 = vector.broadcast %cst_14 : f32 to vector<32x64xf32>
    %30 = arith.maximumf %28, %29 : vector<32x64xf32>
    %31 = tpu.iota {dimensions = array<i32: 0>} : vector<32x1xi32>
    %c16_i32 = arith.constant 16 : i32
    %c0_i32 = arith.constant 0 : i32
    %32 = arith.cmpi eq, %c16_i32, %c0_i32 : i32
    %c1_i32 = arith.constant 1 : i32
    %33 = arith.select %32, %c1_i32, %c16_i32 : i32
    %34 = vector.broadcast %33 : i32 to vector<32x1xi32>
    %35 = arith.remsi %31, %34 : vector<32x1xi32>
    %c0_i32_15 = arith.constant 0 : i32
    %36 = vector.broadcast %c0_i32_15 : i32 to vector<32x1xi32>
    %37 = arith.cmpi ne, %35, %36 : vector<32x1xi32>
    %c0_i32_16 = arith.constant 0 : i32
    %38 = vector.broadcast %c0_i32_16 : i32 to vector<32x1xi32>
    %39 = arith.cmpi slt, %35, %38 : vector<32x1xi32>
    %c0_i32_17 = arith.constant 0 : i32
    %40 = arith.cmpi slt, %33, %c0_i32_17 : i32
    %41 = vector.broadcast %40 : i1 to vector<32x1xi1>
    %42 = vector.broadcast %41 : vector<32x1xi1> to vector<32x1xi1>
    %43 = arith.xori %39, %42 : vector<32x1xi1>
    %44 = arith.andi %43, %37 : vector<32x1xi1>
    %45 = vector.broadcast %33 : i32 to vector<32x1xi32>
    %46 = arith.addi %35, %45 : vector<32x1xi32>
    %47 = arith.select %44, %46, %35 : vector<32x1xi1>, vector<32x1xi32>
    %c0_i32_18 = arith.constant 0 : i32
    %48 = vector.broadcast %c0_i32_18 : i32 to vector<32x1xi32>
    %49 = arith.cmpi eq, %47, %48 : vector<32x1xi32>
    %c1_i32_19 = arith.constant 1 : i32
    %50 = tpu.dynamic_rotate %30 by %c1_i32_19 dim 0 : vector<32x64xf32>, i32 -> vector<32x64xf32>
    %cst_20 = arith.constant 0.000000e+00 : f32
    %51 = vector.shape_cast %49 : vector<32x1xi1> to vector<32x1xi1>
    %52 = vector.broadcast %51 : vector<32x1xi1> to vector<32x64xi1>
    %53 = vector.broadcast %cst_20 : f32 to vector<32x64xf32>
    %54 = arith.select %52, %53, %50 : vector<32x64xi1>, vector<32x64xf32>
    %c16_i32_21 = arith.constant 16 : i32
    %c0_i32_22 = arith.constant 0 : i32
    %55 = arith.cmpi eq, %c16_i32_21, %c0_i32_22 : i32
    %c1_i32_23 = arith.constant 1 : i32
    %56 = arith.select %55, %c1_i32_23, %c16_i32_21 : i32
    %57 = vector.broadcast %56 : i32 to vector<32x1xi32>
    %58 = arith.remsi %31, %57 : vector<32x1xi32>
    %c0_i32_24 = arith.constant 0 : i32
    %59 = vector.broadcast %c0_i32_24 : i32 to vector<32x1xi32>
    %60 = arith.cmpi ne, %58, %59 : vector<32x1xi32>
    %c0_i32_25 = arith.constant 0 : i32
    %61 = vector.broadcast %c0_i32_25 : i32 to vector<32x1xi32>
    %62 = arith.cmpi slt, %58, %61 : vector<32x1xi32>
    %c0_i32_26 = arith.constant 0 : i32
    %63 = arith.cmpi slt, %56, %c0_i32_26 : i32
    %64 = vector.broadcast %63 : i1 to vector<32x1xi1>
    %65 = vector.broadcast %64 : vector<32x1xi1> to vector<32x1xi1>
    %66 = arith.xori %62, %65 : vector<32x1xi1>
    %67 = arith.andi %66, %60 : vector<32x1xi1>
    %68 = vector.broadcast %56 : i32 to vector<32x1xi32>
    %69 = arith.addi %58, %68 : vector<32x1xi32>
    %70 = arith.select %67, %69, %58 : vector<32x1xi1>, vector<32x1xi32>
    %c15_i32 = arith.constant 15 : i32
    %71 = vector.broadcast %c15_i32 : i32 to vector<32x1xi32>
    %72 = arith.cmpi eq, %70, %71 : vector<32x1xi32>
    %c31_i32 = arith.constant 31 : i32
    %73 = tpu.dynamic_rotate %30 by %c31_i32 dim 0 : vector<32x64xf32>, i32 -> vector<32x64xf32>
    %cst_27 = arith.constant 0.000000e+00 : f32
    %74 = vector.shape_cast %72 : vector<32x1xi1> to vector<32x1xi1>
    %75 = vector.broadcast %74 : vector<32x1xi1> to vector<32x64xi1>
    %76 = vector.broadcast %cst_27 : f32 to vector<32x64xf32>
    %77 = arith.select %75, %76, %73 : vector<32x64xi1>, vector<32x64xf32>
    %78 = tpu.concatenate %54, %30, %77 in 1 : vector<32x64xf32>, vector<32x64xf32>, vector<32x64xf32> -> vector<32x192xf32>
    %c0_28 = arith.constant 0 : index
    %c0_29 = arith.constant 0 : index
    %79 = vector.load %arg5[%c0_28, %c0_29] : memref<192x128xf32, #tpu.memory_space<vmem>>, vector<192x128xf32>
    %cst_30 = arith.constant dense<0.000000e+00> : vector<32x128xf32>
    %80 = tpu.matmul %78, %79, %cst_30 {dimension_numbers = #tpu.dot_dimension_numbers<[1], [0], [0], [1], [0, 0, 1, 1], [], []>} : vector<32x192xf32>, vector<192x128xf32>, vector<32x128xf32> -> vector<32x128xf32>
    %cst_31 = arith.constant dense<0.000000e+00> : vector<128xf32>
    %81 = vector.multi_reduction <add>, %80, %cst_31 [0] : vector<32x128xf32> to vector<128xf32>
    %82 = vector.shape_cast %81 : vector<128xf32> to vector<1x128xf32>
    %83 = arith.mulf %80, %80 : vector<32x128xf32>
    %cst_32 = arith.constant dense<0.000000e+00> : vector<128xf32>
    %84 = vector.multi_reduction <add>, %83, %cst_32 [0] : vector<32x128xf32> to vector<128xf32>
    %85 = vector.shape_cast %84 : vector<128xf32> to vector<1x128xf32>
    %86 = tpu.concatenate %82, %85 in 0 : vector<1x128xf32>, vector<1x128xf32> -> vector<2x128xf32>
    %c0_33 = arith.constant 0 : index
    %c0_34 = arith.constant 0 : index
    %87 = vector.load %arg6[%c0_33, %c0_34] : memref<128x128xf32, #tpu.memory_space<vmem>>, vector<128x128xf32>
    %cst_35 = arith.constant dense<0.000000e+00> : vector<2x128xf32>
    %88 = tpu.matmul %86, %87, %cst_35 {dimension_numbers = #tpu.dot_dimension_numbers<[1], [0], [0], [1], [0, 0, 1, 1], [], []>} : vector<2x128xf32>, vector<128x128xf32>, vector<2x128xf32> -> vector<2x128xf32>
    %cst_36 = arith.constant 0.001953125 : f32
    %89 = vector.broadcast %cst_36 : f32 to vector<2x128xf32>
    %90 = arith.mulf %88, %89 : vector<2x128xf32>
    %91 = vector.extract_strided_slice %90 {offsets = [0, 0], sizes = [1, 128], strides = [1, 1]} : vector<2x128xf32> to vector<1x128xf32>
    %92 = vector.extract_strided_slice %90 {offsets = [1, 0], sizes = [1, 128], strides = [1, 1]} : vector<2x128xf32> to vector<1x128xf32>
    %93 = arith.mulf %91, %91 : vector<1x128xf32>
    %94 = arith.subf %92, %93 : vector<1x128xf32>
    %c0_37 = arith.constant 0 : index
    %c0_38 = arith.constant 0 : index
    %95 = vector.load %arg7[%c0_37, %c0_38] : memref<1x128xf32, #tpu.memory_space<vmem>>, vector<1x128xf32>
    %cst_39 = arith.constant 9.99999974E-6 : f32
    %96 = vector.broadcast %cst_39 : f32 to vector<1x128xf32>
    %97 = arith.addf %94, %96 : vector<1x128xf32>
    %98 = math.rsqrt %97 : vector<1x128xf32>
    %99 = arith.mulf %95, %98 : vector<1x128xf32>
    %c0_40 = arith.constant 0 : index
    %c0_41 = arith.constant 0 : index
    %100 = vector.load %arg8[%c0_40, %c0_41] : memref<1x128xf32, #tpu.memory_space<vmem>>, vector<1x128xf32>
    %101 = arith.mulf %91, %99 : vector<1x128xf32>
    %102 = arith.subf %100, %101 : vector<1x128xf32>
    %103 = vector.broadcast %99 : vector<1x128xf32> to vector<32x128xf32>
    %104 = arith.mulf %80, %103 : vector<32x128xf32>
    %105 = vector.broadcast %102 : vector<1x128xf32> to vector<32x128xf32>
    %106 = arith.addf %104, %105 : vector<32x128xf32>
    %cst_42 = arith.constant 0.000000e+00 : f32
    %107 = vector.broadcast %cst_42 : f32 to vector<32x128xf32>
    %108 = arith.maximumf %106, %107 : vector<32x128xf32>
    %c0_43 = arith.constant 0 : index
    %c0_44 = arith.constant 0 : index
    %109 = vector.load %arg9[%c0_43, %c0_44] : memref<32x128xf32, #tpu.memory_space<vmem>>, vector<32x128xf32>
    tpu.vector_store %arg9[%c0_43, %c0_44], %108 {strides = array<i32>} : memref<32x128xf32, #tpu.memory_space<vmem>>, vector<32x128xf32>,
    return
  }
}

</mosaic_0001>

<bundles_post_ra>
// kernel: resblock_forward.1
= control target key start
LH: loop header
LB: loop body
LE: loop exit
PB: predicated region body
PF: predicated region fallthrough
CT: control target
= control target key end

     0   :  { %v841_v0 = vmov 0.0   ;;  %vm64_vm0 = vcmask 523264   ;;  %vm842_vm1 = vmmov 0   ;;  %vm192_vm2 = vcmask 1040384   ;;  %s1342_s1 = inlined_call_operand.vmem [shape: f32[192,64], index: 1, kind: input, shape index: {}]   ;;  %s1343_s0 = inlined_call_operand.vmem [shape: f32[32,192], index: 0, kind: input, shape index: {}]   ;;  %s1344_s2 = inlined_call_operand.vmem [shape: f32[64,64], index: 2, kind: input, shape index: {}]   ;;  %s1345_s5 = inlined_call_operand.vmem [shape: f32[192,128], index: 5, kind: input, shape index: {}]   ;;  %s1346_s3 = inlined_call_operand.vmem [shape: f32[1,64], index: 3, kind: input, shape index: {}]   ;;  %s1347_s4 = inlined_call_operand.vmem [shape: f32[1,64], index: 4, kind: input, shape index: {}]   ;;  %s1348_s6 = inlined_call_operand.vmem [shape: f32[128,128], index: 6, kind: input, shape index: {}]   ;;  %s1349_s7 = inlined_call_operand.vmem [shape: f32[1,128], index: 7, kind: input, shape index: {}]   ;;  %s1350_s8 = inlined_call_operand.vmem [shape: f32[1,128], index: 8, kind: input, shape index: {}]   ;;  %s1351_s9 = inlined_call_operand.vmem [shape: f32[32,128], index: 9, kind: output, shape index: {}]  }
   0x1   :  { %77 = vmatprep.subr.mxu0 %v841_v0  ;;  %v55_v1 = vld [vmem:[%s1342_s1 + $0x78] sm:$0xff]  ;;  %v54_v2 = vld [vmem:[%s1342_s1 + $0x70] sm:$0xff]  ;;  %779 = vmatprep.subr.mxu1 %v841_v0  ;;  %v53_v3 = vld [vmem:[%s1342_s1 + $0x68] sm:$0xff] }
   0x2   :  { %78 = vmatpush1.msra.mxu0 %v55_v1  ;;  %v52_v4 = vld [vmem:[%s1342_s1 + $0x60] sm:$0xff]  ;;  %v51_v5 = vld [vmem:[%s1342_s1 + $0x58] sm:$0xff]  ;;  %v50_v6 = vld [vmem:[%s1342_s1 + $0x50] sm:$0xff]  ;;  %795 = vmatprep.mubr.msk.f32.mxu1 %vm842_vm1, %v841_v0 }
   0x3   :  { %79 = vmatprep.subr.mxu0 %v841_v0  ;;  %v33_v7 = vld [vmem:[%s1343_s0 + $0x8] sm:$0xff]  ;;  %v48_v9 = vld [vmem:[%s1342_s1 + $0x40] sm:$0xff]  ;;  %v47_v10 = vld [vmem:[%s1342_s1 + $0x38] sm:$0xff] }
   0x4   :  { %80 = vmatpush1.msra.mxu0 %v54_v2  ;;  %744 = vmatprep.mubr.msk.f32.mxu0 %vm64_vm0, %v33_v7  ;;  %v49_v8 = vld [vmem:[%s1342_s1 + $0x48] sm:$0xff]  ;;  %v46_v11 = vld [vmem:[%s1342_s1 + $0x30] sm:$0xff]  ;;  %v44_v13 = vld [vmem:[%s1342_s1 + $0x20] sm:$0xff] }
   0x5   :  { %81 = vmatprep.subr.mxu0 %v841_v0  ;;  %v45_v12 = vld [vmem:[%s1342_s1 + $0x28] sm:$0xff]  ;;  %v43_v14 = vld [vmem:[%s1342_s1 + $0x18] sm:$0xff]  ;;  %v42_v15 = vld [vmem:[%s1342_s1 + $0x10] sm:$0xff] }
   0x6   :  { %82 = vmatpush1.msra.mxu0 %v53_v3  ;;  %v41_v16 = vld [vmem:[%s1342_s1 + $0x8] sm:$0xff]  ;;  %v40_v17 = vld [vmem:[%s1342_s1] sm:$0xff]  ;;  %v63_v18 = vld [vmem:[%s1342_s1 + $0xb8] sm:$0xff] }
   0x7   :  { %83 = vmatprep.subr.mxu0 %v841_v0  ;;  %v62_v19 = vld [vmem:[%s1342_s1 + $0xb0] sm:$0xff]  ;;  %v61_v20 = vld [vmem:[%s1342_s1 + $0xa8] sm:$0xff]  ;;  %v60_v21 = vld [vmem:[%s1342_s1 + $0xa0] sm:$0xff] }
   0x8   :  { %84 = vmatpush1.msra.mxu0 %v52_v4  ;;  %v59_v22 = vld [vmem:[%s1342_s1 + $0x98] sm:$0xff]  ;;  %v58_v23 = vld [vmem:[%s1342_s1 + $0x90] sm:$0xff]  ;;  %v57_v24 = vld [vmem:[%s1342_s1 + $0x88] sm:$0xff] }
   0x9   :  { %85 = vmatprep.subr.mxu0 %v841_v0  ;;  %v56_v25 = vld [vmem:[%s1342_s1 + $0x80] sm:$0xff]  ;;  %v35_v27 = vld [vmem:[%s1343_s0 + $0x18] sm:$0xff]  ;;  %v34_v28 = vld [vmem:[%s1343_s0 + $0x10] sm:$0xff] }
   0xa   :  { %86 = vmatpush1.msra.mxu0 %v51_v5  ;;  %v32_v26 = vld [vmem:[%s1343_s0] sm:$0xff]  ;;  %v37_v29 = vld [vmem:[%s1343_s0 + $0x28] sm:$0xff]  ;;  %v39_v31 = vld [vmem:[%s1343_s0 + $0x38] sm:$0xff] }
   0xb   :  { %87 = vmatprep.subr.mxu0 %v841_v0  ;;  %v36_v30 = vld [vmem:[%s1343_s0 + $0x20] sm:$0xff]  ;;  %v38_v32 = vld [vmem:[%s1343_s0 + $0x30] sm:$0xff]  ;;  %v201_v33 = vld [vmem:[%s1344_s2 + $0x38] sm:$0xff] }
   0xc   :  { %88 = vmatpush1.msra.mxu0 %v50_v6  ;;  %780 = vmatpush3.msra.mxu1 %v201_v33  ;;  %v200_v34 = vld [vmem:[%s1344_s2 + $0x30] sm:$0xff]  ;;  %v199_v35 = vld [vmem:[%s1344_s2 + $0x28] sm:$0xff]  ;;  %v198_v36 = vld [vmem:[%s1344_s2 + $0x20] sm:$0xff] }
   0xd   :  { %89 = vmatprep.subr.mxu0 %v841_v0  ;;  %781 = vmatprep.subr.mxu1 %v841_v0  ;;  %v197_v37 = vld [vmem:[%s1344_s2 + $0x18] sm:$0xff]  ;;  %v196_v38 = vld [vmem:[%s1344_s2 + $0x10] sm:$0xff]  ;;  %v195_v39 = vld [vmem:[%s1344_s2 + $0x8] sm:$0xff] }
   0xe   :  { %90 = vmatpush1.msra.mxu0 %v49_v8  ;;  %782 = vmatpush3.msra.mxu1 %v200_v34  ;;  %v194_v40 = vld [vmem:[%s1344_s2] sm:$0xff]  ;;  %v475_v33 = vld [vmem:[%s1345_s5 + $0xb8] sm:$0xff]  ;;  %v474_v34 = vld [vmem:[%s1345_s5 + $0xb0] sm:$0xff] }
   0xf   :  { %91 = vmatprep.subr.mxu0 %v841_v0  ;;  %783 = vmatprep.subr.mxu1 %v841_v0 }
  0x10   :  { %92 = vmatpush1.msra.mxu0 %v48_v9  ;;  %784 = vmatpush3.msra.mxu1 %v199_v35  ;;  %v473_v35 = vld [vmem:[%s1345_s5 + $0xa8] sm:$0xff] }
  0x11   :  { %93 = vmatprep.subr.mxu0 %v841_v0  ;;  %785 = vmatprep.subr.mxu1 %v841_v0 }
  0x12   :  { %94 = vmatpush1.msra.mxu0 %v47_v10  ;;  %786 = vmatpush3.msra.mxu1 %v198_v36  ;;  %v472_v36 = vld [vmem:[%s1345_s5 + $0xa0] sm:$0xff] }
  0x13   :  { %95 = vmatprep.subr.mxu0 %v841_v0  ;;  %787 = vmatprep.subr.mxu1 %v841_v0 }
  0x14   :  { %96 = vmatpush1.msra.mxu0 %v46_v11  ;;  %788 = vmatpush3.msra.mxu1 %v197_v37  ;;  %v471_v37 = vld [vmem:[%s1345_s5 + $0x98] sm:$0xff] }
  0x15   :  { %97 = vmatprep.subr.mxu0 %v841_v0  ;;  %789 = vmatprep.subr.mxu1 %v841_v0 }
  0x16   :  { %98 = vmatpush1.msra.mxu0 %v45_v12  ;;  %790 = vmatpush3.msra.mxu1 %v196_v38  ;;  %v470_v38 = vld [vmem:[%s1345_s5 + $0x90] sm:$0xff] }
  0x17   :  { %99 = vmatprep.subr.mxu0 %v841_v0  ;;  %791 = vmatprep.subr.mxu1 %v841_v0 }
  0x18   :  { %100 = vmatpush1.msra.mxu0 %v44_v13  ;;  %792 = vmatpush3.msra.mxu1 %v195_v39  ;;  %v469_v39 = vld [vmem:[%s1345_s5 + $0x88] sm:$0xff] }
  0x19   :  { %101 = vmatprep.subr.mxu0 %v841_v0  ;;  %793 = vmatprep.subr.mxu1 %v841_v0 }
  0x1a   :  { %102 = vmatpush1.msra.mxu0 %v43_v14  ;;  %794 = vmatpush3.msra.mxu1 %v194_v40 }
  0x1b   :  { %103 = vmatprep.subr.mxu0 %v841_v0  ;;  %488 = vmatprep.subr.mxu1 %v841_v0 }
  0x1c   :  { %104 = vmatpush1.msra.mxu0 %v42_v15 }
  0x1d   :  { %105 = vmatprep.subr.mxu0 %v841_v0 }
  0x1e   :  { %106 = vmatpush1.msra.mxu0 %v41_v16 }
  0x1f   :  { %107 = vmatprep.subr.mxu0 %v841_v0 }
  0x20   :  { %108 = vmatpush1.msra.mxu0 %v40_v17  ;;  %v467_v17 = vld [vmem:[%s1345_s5 + $0x78] sm:$0xff] }
  0x21   :  { %125 = vmatprep.subr.mxu0 %v841_v0 }
  0x22   :  { %126 = vmatpush2.msra.mxu0 %v63_v18  ;;  %v466_v18 = vld [vmem:[%s1345_s5 + $0x70] sm:$0xff] }
  0x23   :  { %127 = vmatprep.subr.mxu0 %v841_v0 }
  0x24   :  { %128 = vmatpush2.msra.mxu0 %v62_v19  ;;  %v465_v19 = vld [vmem:[%s1345_s5 + $0x68] sm:$0xff] }
  0x25   :  { %129 = vmatprep.subr.mxu0 %v841_v0 }
  0x26   :  { %130 = vmatpush2.msra.mxu0 %v61_v20  ;;  %v464_v20 = vld [vmem:[%s1345_s5 + $0x60] sm:$0xff] }
  0x27   :  { %131 = vmatprep.subr.mxu0 %v841_v0 }
  0x28   :  { %132 = vmatpush2.msra.mxu0 %v60_v21  ;;  %v463_v21 = vld [vmem:[%s1345_s5 + $0x58] sm:$0xff] }
  0x29   :  { %133 = vmatprep.subr.mxu0 %v841_v0 }
  0x2a   :  { %134 = vmatpush2.msra.mxu0 %v59_v22  ;;  %v462_v22 = vld [vmem:[%s1345_s5 + $0x50] sm:$0xff] }
  0x2b   :  { %135 = vmatprep.subr.mxu0 %v841_v0 }
  0x2c   :  { %136 = vmatpush2.msra.mxu0 %v58_v23  ;;  %v461_v23 = vld [vmem:[%s1345_s5 + $0x48] sm:$0xff] }
  0x2d   :  { %137 = vmatprep.subr.mxu0 %v841_v0 }
  0x2e   :  { %138 = vmatpush2.msra.mxu0 %v57_v24  ;;  %v460_v24 = vld [vmem:[%s1345_s5 + $0x40] sm:$0xff] }
  0x2f   :  { %139 = vmatprep.subr.mxu0 %v841_v0 }
  0x30   :  { %140 = vmatpush2.msra.mxu0 %v56_v25  ;;  %v459_v25 = vld [vmem:[%s1345_s5 + $0x38] sm:$0xff] }
  0x31   :  { %142 = vmatmul.mubr.f32.vlgmr.msra.gmra.mxu0 %v32_v26  ;;  %798 = vmatprep.subr.mxu0 %v841_v0  ;;  %v458_v26 = vld [vmem:[%s1345_s5 + $0x30] sm:$0xff] }
  0x32   :  { %745 = vmatprep.mubr.msk.f32.mxu0 %vm64_vm0, %v35_v27  ;;  %v457_v27 = vld [vmem:[%s1345_s5 + $0x28] sm:$0xff] }
  0x35   :  { %147 = vmatmul.mubr.f32.gmra.mxu0 %v34_v28  ;;  %v456_v28 = vld [vmem:[%s1345_s5 + $0x20] sm:$0xff] }
  0x36   :  { %746 = vmatprep.mubr.msk.f32.mxu0 %vm64_vm0, %v37_v29  ;;  %v455_v29 = vld [vmem:[%s1345_s5 + $0x18] sm:$0xff] }
  0x39   :  { %152 = vmatmul.mubr.f32.gmra.mxu0 %v36_v30  ;;  %v454_v30 = vld [vmem:[%s1345_s5 + $0x10] sm:$0xff] }
  0x3a   :  { %747 = vmatprep.mubr.msk.f32.mxu0 %vm64_vm0, %v39_v31  ;;  %v453_v31 = vld [vmem:[%s1345_s5 + $0x8] sm:$0xff] }
  0x3d   :  { %157 = vmatmul.mubr.f32.gmra.mxu0 %v38_v32  ;;  %v452_v32 = vld [vmem:[%s1345_s5] sm:$0xff] }
  0x3e   :  { %830 = vmatprep.mubr.msk.f32.mxu0 %vm842_vm1, %v841_v0 }
  0xf1   :  { %v1055_v41 = vpop.f32.mrf.mxu0 }
  0xf2   :  { %v175_v46 = vmul.f32 %v1055_v41, %v1055_v41  ;;  %v162_v49 = vsel %vm64_vm0, %v1055_v41, 0.0 }
  0xf3   :  { %v145_v42 = vpop.f32.mrf.mxu0 }
  0xf4   :  { %v179_v55 = vsel %vm64_vm0, %v175_v46, 0.0 }
  0xf5   :  { %v1057_v43 = vpop.f32.mrf.mxu0 }
  0xf6   :  { %v176_v44 = vmul.f32 %v1057_v43, %v1057_v43  ;;  %v163_v47 = vsel %vm64_vm0, %v1057_v43, 0.0 }
  0xf7   :  { %v150_v45 = vpop.f32.mrf.mxu0  ;;  %v164_v53 = vadd.f32 %v163_v47, %v162_v49 }
  0xf8   :  { %v180_v50 = vsel %vm64_vm0, %v176_v44, 0.0 }
  0xf9   :  { %v1065_v48 = vpop.f32.mrf.mxu0  ;;  %v181_v57 = vadd.f32 %v180_v50, %v179_v55  ;;  %v843_v50 = vmov 1966171168  }
  0xfa   :  { %v165_v51 = vsel %vm64_vm0, %v1065_v48, 0.0  ;;  %v177_v52 = vmul.f32 %v1065_v48, %v1065_v48 }
  0xfb   :  { %v155_v54 = vpop.f32.mrf.mxu0  ;;  %v166_v58 = vadd.f32 %v165_v51, %v164_v53  ;;  %v286_v51 = vunpack.c.l.s4 %v843_v50 }
  0xfc   :  { %v182_v56 = vsel %vm64_vm0, %v177_v52, 0.0  ;;  %v288_v52 = vlaneseq }
  0xfd   :  { %v1076_v59 = vpop.f32.mrf.mxu0  ;;  %v183_v62 = vadd.f32 %v182_v56, %v181_v57  ;;  %v287_v53 = vunpack.c.0.s8 %v286_v51 }
  0xfe   :  { %v167_v60 = vsel %vm64_vm0, %v1076_v59, 0.0  ;;  %v178_v61 = vmul.f32 %v1076_v59, %v1076_v59  ;;  %v1177_v54 = vshrl.u32 %v288_v52, 7 }
  0xff   :  { %v168_v63 = vadd.f32 %v167_v60, %v166_v58  ;;  %v160_v1 = vpop.f32.mrf.mxu0  ;;  %v281_v60 = vld [vmem:[%s1346_s3] sm:$0x1]  ;;  %s844_s3 = smov 64  }
 0x100   :  { %v184_v2 = vsel %vm64_vm0, %v178_v61, 0.0  ;;  %v1180_v55 = vsub.s32 %v287_v53, %v1177_v54  ;;  %vm415_vm3 = vcmp.lt.s32.totalorder %v1177_v54, 7  ;;  %vm390_vm5 = vcmp.lt.s32.totalorder %v1177_v54, 1 }
 0x101   :  { %v169_v3 = vrot.slane %v168_v63, 4  ;;  %v185_v4 = vadd.f32 %v184_v2, %v183_v62  ;;  %v1188_v62 = vsub.s32 0, %v1177_v54  ;;  %v302_v2 = vld [vmem:[%s1347_s4] sm:$0x1] }
 0x103   :  { %v170_v5 = vadd.f32 %v169_v3, %v168_v63  ;;  %v186_v6 = vrot.slane %v185_v4, 4  ;;  %v468_v63 = vld [vmem:[%s1345_s5 + $0x80] sm:$0xff] }
 0x105   :  { %v171_v7 = vrot.slane %v170_v5, 2  ;;  %v187_v8 = vadd.f32 %v186_v6, %v185_v4 }
 0x107   :  { %v172_v9 = vadd.f32 %v171_v7, %v170_v5  ;;  %v188_v10 = vrot.slane %v187_v8, 2  ;;  %v331_v5 = vadd.s32 8, %v1177_v54 }
 0x109   :  { %v173_v11 = vrot.slane %v172_v9, 1  ;;  %v189_v12 = vadd.f32 %v188_v10, %v187_v8  ;;  %v332_v8 = vadd.s32 16, %v1177_v54 }
 0x10b   :  { %v190_v13 = vrot.slane %v189_v12, 1  ;;  %v174_v14 = vadd.f32 %v173_v11, %v172_v9  ;;  %v333_v9 = vadd.s32 24, %v1177_v54 }
 0x10d   :  { %v191_v15 = vadd.f32 %v190_v13, %v189_v12 }
 0x10f   :  { %v193_v16 = vsel %vm192_vm2, %v174_v14, %v191_v15  ;;  %v338_v14 = vand.u32 15, %v1177_v54  ;;  %v345_v15 = vand.u32 15, %v331_v5  ;;  %v603_v5 = vld [vmem:[%s1348_s6 + $0x38] sm:$0xff] }
 0x110   :  { %796 = vmatmul.mubr.msk.f32.vlgmr.msra.gmra.mxu1 %vm64_vm0, %v193_v16 }
 0x111   :  { %489 = vmatpush1.msra.mxu1 %v467_v17  ;;  %vm1207_vm4 = vcmp.eq.s32.totalorder %v338_v14, 0  ;;  %vm1212_vm6 = vcmp.eq.s32.totalorder %v345_v15, 15 }
 0x112   :  { %490 = vmatprep.subr.mxu1 %v841_v0 }
 0x113   :  { %491 = vmatpush1.msra.mxu1 %v466_v18 }
 0x114   :  { %492 = vmatprep.subr.mxu1 %v841_v0 }
 0x115   :  { %493 = vmatpush1.msra.mxu1 %v465_v19 }
 0x116   :  { %494 = vmatprep.subr.mxu1 %v841_v0 }
 0x117   :  { %495 = vmatpush1.msra.mxu1 %v464_v20  ;;  %v359_v20 = vand.u32 15, %v333_v9  ;;  %v599_v9 = vld [vmem:[%s1348_s6 + $0x18] sm:$0xff] }
 0x118   :  { %496 = vmatprep.subr.mxu1 %v841_v0 }
 0x119   :  { %497 = vmatpush1.msra.mxu1 %v463_v21  ;;  %vm1220_vm8 = vcmp.eq.s32.totalorder %v359_v20, 15 }
 0x11a   :  { %498 = vmatprep.subr.mxu1 %v841_v0 }
 0x11b   :  { %499 = vmatpush1.msra.mxu1 %v462_v22 }
 0x11c   :  { %500 = vmatprep.subr.mxu1 %v841_v0 }
 0x11d   :  { %501 = vmatpush1.msra.mxu1 %v461_v23 }
 0x11e   :  { %502 = vmatprep.subr.mxu1 %v841_v0 }
 0x11f   :  { %503 = vmatpush1.msra.mxu1 %v460_v24 }
 0x120   :  { %504 = vmatprep.subr.mxu1 %v841_v0 }
 0x121   :  { %505 = vmatpush1.msra.mxu1 %v459_v25 }
 0x122   :  { %506 = vmatprep.subr.mxu1 %v841_v0 }
 0x123   :  { %507 = vmatpush1.msra.mxu1 %v458_v26 }
 0x124   :  { %508 = vmatprep.subr.mxu1 %v841_v0 }
 0x125   :  { %509 = vmatpush1.msra.mxu1 %v457_v27 }
 0x126   :  { %510 = vmatprep.subr.mxu1 %v841_v0 }
 0x127   :  { %511 = vmatpush1.msra.mxu1 %v456_v28 }
 0x128   :  { %512 = vmatprep.subr.mxu1 %v841_v0 }
 0x129   :  { %513 = vmatpush1.msra.mxu1 %v455_v29 }
 0x12a   :  { %514 = vmatprep.subr.mxu1 %v841_v0 }
 0x12b   :  { %515 = vmatpush1.msra.mxu1 %v454_v30 }
 0x12c   :  { %516 = vmatprep.subr.mxu1 %v841_v0 }
 0x12d   :  { %517 = vmatpush1.msra.mxu1 %v453_v31 }
 0x12e   :  { %518 = vmatprep.subr.mxu1 %v841_v0 }
 0x12f   :  { %519 = vmatpush1.msra.mxu1 %v452_v32 }
 0x130   :  { %536 = vmatprep.subr.mxu1 %v841_v0 }
 0x131   :  { %537 = vmatpush2.msra.mxu1 %v475_v33 }
 0x132   :  { %538 = vmatprep.subr.mxu1 %v841_v0 }
 0x133   :  { %539 = vmatpush2.msra.mxu1 %v474_v34  ;;  %v611_v34 = vld [vmem:[%s1348_s6 + $0x78] sm:$0xff] }
 0x134   :  { %540 = vmatprep.subr.mxu1 %v841_v0  ;;  %799 = vmatpush3.msra.mxu0 %v611_v34 }
 0x135   :  { %541 = vmatpush2.msra.mxu1 %v473_v35  ;;  %800 = vmatprep.subr.mxu0 %v841_v0 }
 0x136   :  { %542 = vmatprep.subr.mxu1 %v841_v0 }
 0x137   :  { %543 = vmatpush2.msra.mxu1 %v472_v36 }
 0x138   :  { %544 = vmatprep.subr.mxu1 %v841_v0 }
 0x139   :  { %545 = vmatpush2.msra.mxu1 %v471_v37 }
 0x13a   :  { %546 = vmatprep.subr.mxu1 %v841_v0 }
 0x13b   :  { %547 = vmatpush2.msra.mxu1 %v470_v38 }
 0x13c   :  { %548 = vmatprep.subr.mxu1 %v841_v0 }
 0x13d   :  { %549 = vmatpush2.msra.mxu1 %v469_v39 }
 0x13e   :  { %550 = vmatprep.subr.mxu1 %v841_v0 }
 0x13f   :  { %551 = vmatpush2.msra.mxu1 %v468_v63  ;;  %v608_v63 = vld [vmem:[%s1348_s6 + $0x60] sm:$0xff] }
 0x1d0   :  { %v271_v40 = vpop.f32.mrf.mxu1 }
 0x1d1   :  { %v275_v42 = vmul.f32 0.001953125, %v271_v40 }
 0x1d2   :  { %v797_v44 = vpop.f32.mrf.mxu1 }
 0x1d3   :  { %v276_v45 = vmul.f32 %v275_v42, %v275_v42 }
 0x1d5   :  { %v278_v46 = vrot.slane %v276_v45, 7 }
 0x1d7   :  { %v280_v47 = vsub.f32 %v275_v42, %v278_v46 }
 0x1d9   :  { %v282_v49 = vadd.f32 1e-05, %v280_v47 }
 0x1db   :  { %837 = vrsqrt.f32 %v282_v49 }
 0x1e8   :  { %v838_v56 = vpop.eup %837 }
 0x1e9   :  { %v291_v57 = vrot.slane %v838_v56, %v1180_v55 }
 0x1eb   :  { %v292_v58 = vcombine.high %v291_v57, %v291_v57 }
 0x1ed   :  { %v299_v61 = vrot.slane %v292_v58, %v1180_v55 }
 0x1ef   :  { %v301_v1 = vmul.f32 %v299_v61, %v281_v60  ;;  %v610_v60 = vld [vmem:[%s1348_s6 + $0x70] sm:$0xff]  ;;  %v609_v61 = vld [vmem:[%s1348_s6 + $0x68] sm:$0xff] }
 0x1f0   :  { %801 = vmatpush3.msra.mxu0 %v610_v60 }
 0x1f1   :  { %v303_v3 = vmul.f32 %v301_v1, %v275_v42  ;;  %v309_v4 = vrot.slane %v301_v1, %v1188_v62  ;;  %802 = vmatprep.subr.mxu0 %v841_v0  ;;  %v607_v1 = vld [vmem:[%s1348_s6 + $0x58] sm:$0xff] }
 0x1f2   :  { %803 = vmatpush3.msra.mxu0 %v609_v61 }
 0x1f3   :  { %v304_v6 = vsub.f32 %v302_v2, %v303_v3  ;;  %v313_v7 = vmul.f32 %v309_v4, %v1065_v48  ;;  %v311_v11 = vmul.f32 %v309_v4, %v1055_v41  ;;  %v312_v12 = vmul.f32 %v309_v4, %v1057_v43  ;;  %804 = vmatprep.subr.mxu0 %v841_v0  ;;  %v606_v2 = vld [vmem:[%s1348_s6 + $0x50] sm:$0xff]  ;;  %v605_v3 = vld [vmem:[%s1348_s6 + $0x48] sm:$0xff] }
 0x1f4   :  { %v314_v13 = vmul.f32 %v309_v4, %v1076_v59  ;;  %v352_v48 = vand.u32 15, %v332_v8  ;;  %805 = vmatpush3.msra.mxu0 %v608_v63  ;;  %v604_v4 = vld [vmem:[%s1348_s6 + $0x40] sm:$0xff] }
 0x1f5   :  { %v319_v10 = vrot.slane %v304_v6, %v1188_v62  ;;  %806 = vmatprep.subr.mxu0 %v841_v0  ;;  %v602_v6 = vld [vmem:[%s1348_s6 + $0x30] sm:$0xff]  ;;  %v600_v8 = vld [vmem:[%s1348_s6 + $0x20] sm:$0xff] }
 0x1f6   :  { %vm1216_vm7 = vcmp.eq.s32.totalorder %v352_v48, 0  ;;  %807 = vmatpush3.msra.mxu0 %v607_v1 }
 0x1f7   :  { %v323_v16 = vadd.f32 %v319_v10, %v313_v7  ;;  %v321_v17 = vadd.f32 %v319_v10, %v311_v11  ;;  %v322_v18 = vadd.f32 %v319_v10, %v312_v12  ;;  %v324_v19 = vadd.f32 %v319_v10, %v314_v13  ;;  %808 = vmatprep.subr.mxu0 %v841_v0  ;;  %v601_v7 = vld [vmem:[%s1348_s6 + $0x28] sm:$0xff]  ;;  %v598_v10 = vld [vmem:[%s1348_s6 + $0x10] sm:$0xff]  ;;  %v596_v12 = vld [vmem:[%s1348_s6] sm:$0xff] }
 0x1f8   :  { %809 = vmatpush3.msra.mxu0 %v606_v2  ;;  %v597_v11 = vld [vmem:[%s1348_s6 + $0x8] sm:$0xff] }
 0x1f9   :  { %v327_v21 = vmax.f32 %v323_v16, 0.0  ;;  %v325_v22 = vmax.f32 %v321_v17, 0.0  ;;  %v326_v23 = vmax.f32 %v322_v18, 0.0  ;;  %v328_v24 = vmax.f32 %v324_v19, 0.0  ;;  %810 = vmatprep.subr.mxu0 %v841_v0 }
 0x1fa   :  { %811 = vmatpush3.msra.mxu0 %v605_v3 }
 0x1fb   :  { %440 = vrot.lane.b32.xlu1 %v327_v21, %s844_s3  ;;  %v388_v59 = vrot.slane %v327_v21, 7  ;;  %v413_v25 = vrot.slane %v327_v21, 1  ;;  %436 = vrot.lane.b32.xlu0 %v325_v22, %s844_s3  ;;  %v386_v26 = vrot.slane %v325_v22, 7  ;;  %v411_v27 = vrot.slane %v325_v22, 1 }
 0x1fc   :  { %v412_v28 = vrot.slane %v326_v23, 1  ;;  %v389_v29 = vrot.slane %v328_v24, 7  ;;  %v387_v30 = vrot.slane %v326_v23, 7  ;;  %v414_v31 = vrot.slane %v328_v24, 1  ;;  %812 = vmatprep.subr.mxu0 %v841_v0 }
 0x1fd   :  { %813 = vmatpush3.msra.mxu0 %v604_v4 }
 0x1fe   :  { %v418_v35 = vsel %vm415_vm3, %v411_v27, %v412_v28  ;;  %v394_v36 = vsel %vm390_vm5, %v389_v29, %v386_v26  ;;  %v417_v37 = vsel %vm415_vm3, %v412_v28, %v413_v25  ;;  %v393_v38 = vsel %vm390_vm5, %v386_v26, %v387_v30  ;;  %814 = vmatprep.subr.mxu0 %v841_v0 }
 0x1ff   :  { %749 = vmatprep.mubr.msk.f32.mxu1 %vm64_vm0, %v418_v35  ;;  %442 = vrot.lane.b32.xlu1 %v328_v24, %s844_s3  ;;  %v403_v39 = vsel %vm1207_vm4, 0.0, %v394_v36  ;;  %v429_v40 = vsel %vm1212_vm6, 0.0, %v417_v37  ;;  %v416_v42 = vsel %vm415_vm3, %v413_v25, %v414_v31  ;;  %v392_v44 = vsel %vm390_vm5, %v387_v30, %v388_v59 }
 0x200   :  { %438 = vrot.lane.b32.xlu0 %v326_v23, %s844_s3  ;;  %v405_v45 = vsel %vm1216_vm7, 0.0, %v392_v44  ;;  %v419_v46 = vsel %vm415_vm3, %v414_v31, %v411_v27  ;;  %v391_v47 = vsel %vm390_vm5, %v388_v59, %v389_v29  ;;  %815 = vmatpush3.msra.mxu0 %v603_v5 }
 0x201   :  { %v431_v49 = vsel %vm1220_vm8, 0.0, %v419_v46  ;;  %816 = vmatprep.subr.mxu0 %v841_v0 }
 0x202   :  { %817 = vmatpush3.msra.mxu0 %v602_v6 }
 0x203   :  { %818 = vmatprep.subr.mxu0 %v841_v0 }
 0x204   :  { %819 = vmatpush3.msra.mxu0 %v601_v7 }
 0x205   :  { %820 = vmatprep.subr.mxu0 %v841_v0 }
 0x206   :  { %821 = vmatpush3.msra.mxu0 %v600_v8 }
 0x207   :  { %822 = vmatprep.subr.mxu0 %v841_v0 }
 0x208   :  { %823 = vmatpush3.msra.mxu0 %v599_v9 }
 0x209   :  { %824 = vmatprep.subr.mxu0 %v841_v0 }
 0x20a   :  { %825 = vmatpush3.msra.mxu0 %v598_v10 }
 0x20b   :  { %826 = vmatprep.subr.mxu0 %v841_v0 }
 0x20c   :  { %827 = vmatpush3.msra.mxu0 %v597_v11 }
 0x20d   :  { %828 = vmatprep.subr.mxu0 %v841_v0 }
 0x20e   :  { %829 = vmatpush3.msra.mxu0 %v596_v12 }
 0x26d   :  { %v437_v50 = vpop.permute.xlu0 %436  ;;  %v441_v52 = vpop.permute.xlu1 %440 }
 0x26e   :  { %v448_v51 = vsel %vm64_vm0, %v403_v39, %v437_v50  ;;  %v450_v54 = vsel %vm64_vm0, %v405_v45, %v441_v52  ;;  %v688_v52 = vld [vmem:[%s1349_s7] sm:$0x1] }
 0x26f   :  { %553 = vmatmul.mubr.f32.vlgmr.msra.gmra.mxu1 %v448_v51 }
 0x270   :  { %750 = vmatprep.mubr.msk.f32.mxu1 %vm64_vm0, %v429_v40 }
 0x271   :  { %v443_v57 = vpop.permute.xlu1 %442 }
 0x272   :  { %v439_v53 = vpop.permute.xlu0 %438  ;;  %v451_v58 = vsel %vm64_vm0, %v391_v47, %v443_v57 }
 0x273   :  { %v449_v56 = vsel %vm64_vm0, %v393_v38, %v439_v53 }
 0x274   :  { %558 = vmatmul.mubr.f32.gmra.mxu1 %v449_v56 }
 0x275   :  { %751 = vmatprep.mubr.msk.f32.mxu1 %vm64_vm0, %v416_v42 }
 0x278   :  { %563 = vmatmul.mubr.f32.gmra.mxu1 %v450_v54  ;;  %v709_v54 = vld [vmem:[%s1350_s8] sm:$0x1] }
 0x279   :  { %752 = vmatprep.mubr.msk.f32.mxu1 %vm64_vm0, %v431_v49 }
 0x27c   :  { %568 = vmatmul.mubr.f32.gmra.mxu1 %v451_v58 }
 0x32f   :  { %v554_v13 = vpop.f32.mrf.mxu1 }
 0x330   :  { %v582_v19 = vmul.f32 %v554_v13, %v554_v13 }
 0x331   :  { %v556_v14 = vpop.f32.mrf.mxu1 }
 0x334   :  { %v559_v15 = vpop.f32.mrf.mxu1 }
 0x335   :  { %v583_v17 = vmul.f32 %v559_v15, %v559_v15  ;;  %v573_v48 = vadd.f32 %v559_v15, %v554_v13 }
 0x336   :  { %v561_v16 = vpop.f32.mrf.mxu1 }
 0x337   :  { %v586_v22 = vadd.f32 %v583_v17, %v582_v19 }
 0x338   :  { %v564_v18 = vpop.f32.mrf.mxu1 }
 0x339   :  { %v584_v20 = vmul.f32 %v564_v18, %v564_v18  ;;  %v574_v23 = vadd.f32 %v573_v48, %v564_v18 }
 0x33a   :  { %v566_v21 = vpop.f32.mrf.mxu1 }
 0x33b   :  { %v587_v41 = vadd.f32 %v586_v22, %v584_v20 }
 0x33c   :  { %v569_v24 = vpop.f32.mrf.mxu1 }
 0x33d   :  { %v575_v43 = vadd.f32 %v574_v23, %v569_v24  ;;  %v585_v59 = vmul.f32 %v569_v24, %v569_v24 }
 0x33e   :  { %v571_v25 = vpop.f32.mrf.mxu1 }
 0x33f   :  { %v576_v26 = vrot.slane %v575_v43, 4  ;;  %v588_v0 = vadd.f32 %v587_v41, %v585_v59 }
 0x341   :  { %v577_v27 = vadd.f32 %v576_v26, %v575_v43  ;;  %v589_v28 = vrot.slane %v588_v0, 4 }
 0x343   :  { %v578_v29 = vrot.slane %v577_v27, 2  ;;  %v590_v30 = vadd.f32 %v589_v28, %v588_v0 }
 0x345   :  { %v579_v31 = vadd.f32 %v578_v29, %v577_v27  ;;  %v591_v32 = vrot.slane %v590_v30, 2 }
 0x347   :  { %v580_v33 = vrot.slane %v579_v31, 1  ;;  %v592_v34 = vadd.f32 %v591_v32, %v590_v30 }
 0x349   :  { %v593_v35 = vrot.slane %v592_v34, 1  ;;  %v581_v36 = vadd.f32 %v580_v33, %v579_v31 }
 0x34b   :  { %v594_v37 = vadd.f32 %v593_v35, %v592_v34 }
 0x34d   :  { %v595_v38 = vsel %vm192_vm2, %v581_v36, %v594_v37 }
 0x34e   :  { %831 = vmatmul.mubr.f32.vlgmr.msra.gmra.mxu0 %v595_v38 }
 0x40e   :  { %v678_v39 = vpop.f32.mrf.mxu0 }
 0x40f   :  { %v682_v40 = vmul.f32 0.001953125, %v678_v39 }
 0x410   :  { %v832_v42 = vpop.f32.mrf.mxu0 }
 0x411   :  { %v683_v44 = vmul.f32 %v682_v40, %v682_v40 }
 0x413   :  { %v685_v45 = vrot.slane %v683_v44, 7 }
 0x415   :  { %v687_v46 = vsub.f32 %v682_v40, %v685_v45 }
 0x417   :  { %v689_v47 = vadd.f32 1e-05, %v687_v46 }
 0x419   :  { %839 = vrsqrt.f32 %v689_v47 }
 0x426   :  { %v840_v49 = vpop.eup %839 }
 0x427   :  { %v698_v50 = vrot.slane %v840_v49, %v1180_v55 }
 0x429   :  { %v699_v51 = vcombine.high %v698_v50, %v698_v50 }
 0x42b   :  { %v706_v53 = vrot.slane %v699_v51, %v1180_v55 }
 0x42d   :  { %v708_v56 = vmul.f32 %v706_v53, %v688_v52 }
 0x42f   :  { %v710_v57 = vmul.f32 %v708_v56, %v682_v40  ;;  %v716_v58 = vrot.slane %v708_v56, %v1188_v62 }
 0x431   :  { %v711_v60 = vsub.f32 %v709_v54, %v710_v57  ;;  %v718_v61 = vmul.f32 %v716_v58, %v554_v13  ;;  %v719_v63 = vmul.f32 %v716_v58, %v559_v15  ;;  %v720_v1 = vmul.f32 %v716_v58, %v564_v18 }
 0x432   :  { %v721_v2 = vmul.f32 %v716_v58, %v569_v24 }
 0x433   :  { %v726_v3 = vrot.slane %v711_v60, %v1188_v62 }
 0x435   :  { %v728_v4 = vadd.f32 %v726_v3, %v718_v61  ;;  %v729_v5 = vadd.f32 %v726_v3, %v719_v63  ;;  %v730_v6 = vadd.f32 %v726_v3, %v720_v1  ;;  %v731_v7 = vadd.f32 %v726_v3, %v721_v2 }
 0x437   :  { %v732_v55 = vmax.f32 %v728_v4, 0.0  ;;  %v733_v8 = vmax.f32 %v729_v5, 0.0  ;;  %v734_v9 = vmax.f32 %v730_v6, 0.0  ;;  %v735_v10 = vmax.f32 %v731_v7, 0.0 }
 0x439   :  { %736 = vst [vmem:[%s1351_s9] sm:$0xff] %v732_v55  ;;  %737 = vst [vmem:[%s1351_s9 + $0x8] sm:$0xff] %v733_v8 }
 0x43a   :  { %738 = vst [vmem:[%s1351_s9 + $0x10] sm:$0xff] %v734_v9  ;;  %739 = vst [vmem:[%s1351_s9 + $0x18] sm:$0xff] %v735_v10 }

</bundles_post_ra>
